<compile_context>
chip_gen: v6e
topology: v6e:2x2x1
jax: 0.10.0
libtpu: 0.0.40
codegen_flags: <defaults>
</compile_context>

<pallas_src>
import functools

import jax
import jax.numpy as jnp
from jax import lax
from jax.experimental import pallas as pl
from jax.experimental.pallas import tpu as pltpu


# ----------------------------------------------------------------------------
# Kernel: three lane-dense matmuls + softplus on the var column.  No reshapes.
# ----------------------------------------------------------------------------
def _critic_kernel(x_ref, act_ref, w1_ref, b1_ref, w2_ref, b2_ref,
                   wphi_ref, ww0_ref, wact_ref, b34_ref, out_ref):
    xs = x_ref[...]                                            # [TB, F*T*A] bf16

    # conv1: block-Toeplitz/block-diag weight -> one MXU matmul, phi1 already
    # grouped as [TB, A*T2*H2] (asset-major, time, channel).
    phi1 = jnp.maximum(
        jnp.dot(xs, w1_ref[...], preferred_element_type=jnp.float32)
        + b1_ref[...], 0.0).astype(w2_ref.dtype)

    # conv2: block-diagonal weight -> lane-dense phi2 [TB, A*H1], no reshape.
    phi2 = jnp.maximum(
        jnp.dot(phi1, w2_ref[...], preferred_element_type=jnp.float32)
        + b2_ref[...], 0.0).astype(wphi_ref.dtype)

    # layer3/4 on cat([phi2, w0, action]) expressed as three dots (no concat);
    # the w0 channel is read straight from the x slab (columns 0..A-1).
    mv = (jnp.dot(phi2, wphi_ref[...], preferred_element_type=jnp.float32)
          + jnp.dot(xs, ww0_ref[...], preferred_element_type=jnp.float32)
          + jnp.dot(act_ref[...], wact_ref[...], preferred_element_type=jnp.float32)
          + b34_ref[...])                                      # [TB, 2]

    # softplus only on the var column (select, no concat).
    is_var = lax.broadcasted_iota(jnp.int32, mv.shape, 1) == 1
    out_ref[...] = jnp.where(is_var, jax.nn.softplus(mv), mv)


# ----------------------------------------------------------------------------
# One-time parameter re-layout (run once per weight update, not per forward).
# ----------------------------------------------------------------------------
def prepare_critic_params(params):
    conv1_w, conv1_b, conv2_w, conv2_b, l3_w, l3_b, l4_w, l4_b = params
    H2, F, KT, _ = conv1_w.shape
    H1, H2b, T2, _ = conv2_w.shape
    assert H2b == H2
    A = l3_w.shape[1] // (H1 + 2)
    assert l3_w.shape == (1, (H1 + 2) * A) and l4_w.shape == l3_w.shape
    T = T2 + KT                       # window length (module drops t=0)

    f32, bf16 = jnp.float32, jnp.bfloat16
    eyeA = jnp.eye(A, dtype=f32)

    # conv1 -> W1[f*T*A + t_in*A + a_in, a_out*T2*H2 + t_out*H2 + c]
    #        = conv1_w[c, f, t_in-1-t_out, 0] if a_in==a_out and 0<=t_in-1-t_out<KT
    w1t = jnp.transpose(conv1_w[:, :, :, 0], (1, 2, 0)).astype(f32)   # [F, KT, H2]
    W1 = jnp.zeros((F, T, A, A, T2, H2), f32)
    for t_out in range(T2):
        for k in range(KT):
            blk = w1t[:, k, None, None, :] * eyeA[None, :, :, None]   # [F, A, A, H2]
            W1 = W1.at[:, 1 + t_out + k, :, :, t_out, :].set(blk)
    W1 = W1.reshape(F * T * A, A * T2 * H2)
    b1 = jnp.tile(conv1_b.astype(f32), A * T2)[None, :]               # [1, A*T2*H2]

    # conv2 -> block-diag W2[a*T2*H2 + t*H2 + c, a*H1 + h1] = conv2_w[h1, c, t, 0]
    w2flat = jnp.transpose(conv2_w[:, :, :, 0],
                           (2, 1, 0)).reshape(T2 * H2, H1).astype(f32)
    W2 = (eyeA[:, None, :, None] * w2flat[None, :, None, :]
          ).reshape(A * T2 * H2, A * H1)
    b2 = jnp.tile(conv2_b.astype(f32), A)[None, :]                    # [1, A*H1]

    # layer3/4: PyTorch flatten of h is channel-major (col = c*A + a).
    l34 = jnp.stack([l3_w[0], l4_w[0]], axis=1).reshape(H1 + 2, A, 2).astype(f32)
    wphi = jnp.transpose(l34[:H1], (1, 0, 2)).reshape(A * H1, 2)      # row = a*H1 + c
    ww0 = jnp.zeros((F * T * A, 2), f32).at[:A].set(l34[H1])          # w0 -> slab cols a
    wact = jnp.concatenate([jnp.zeros((1, 2), f32), l34[H1 + 1]], axis=0)  # [A+1, 2]
    b34 = jnp.concatenate([l3_b, l4_b]).astype(f32)[None, :]          # [1, 2]

    prepared = (W1.astype(bf16), b1, W2.astype(bf16), b2,
                wphi.astype(bf16), ww0.astype(bf16), wact.astype(bf16), b34)
    dims = (F, T, T2, H2, H1, A)
    return prepared, dims


def _choose_tiling(B):
    """Pad batch and pick a 16-aligned tile: >=2 grid steps (v7x megacore),
    <=512 rows/tile, minimal padding."""
    TB_MAX = 512
    Bp = -(-max(B, 1) // 16) * 16
    steps = max(2, -(-Bp // TB_MAX))
    TB = -(-Bp // (steps * 16)) * 16
    Bp = steps * TB
    return Bp, TB


# ----------------------------------------------------------------------------
# Forward
# ----------------------------------------------------------------------------
def critic_forward(x, action, prepared, dims):
    """Pallas implementation of DeterministicCriticNetCVaR.forward."""
    W1, b1, W2, b2, wphi, ww0, wact, b34 = prepared
    F, T, T2, H2, H1, A = dims
    B = x.shape[0]
    assert x.shape == (B, F, T, A)
    assert action.shape == (B, A + 1)

    cdt = W1.dtype                                   # bf16 compute dtype
    # Raw flattened x slab (contiguous reshape -> no relayout) + raw action.
    xslab = x.reshape(B, F * T * A).astype(cdt)
    act = action.astype(cdt)

    Bp, TB = _choose_tiling(B)
    if Bp != B:
        xslab = jnp.pad(xslab, ((0, Bp - B), (0, 0)))
        act = jnp.pad(act, ((0, Bp - B), (0, 0)))

    grid = (Bp // TB,)
    row = lambda i: (i, 0)
    rep = lambda i: (0, 0)

    flops = 2 * Bp * (W1.shape[0] * W1.shape[1] + W2.shape[0] * W2.shape[1]
                      + wphi.shape[0] * 2 + ww0.shape[0] * 2 + wact.shape[0] * 2)
    bytes_accessed = ((xslab.size + act.size) * 2
                      + sum(w.size * 2 for w in (W1, W2, wphi, ww0, wact))
                      + (b1.size + b2.size + b34.size) * 4 + Bp * 2 * 4)

    out = pl.pallas_call(
        _critic_kernel,
        out_shape=jax.ShapeDtypeStruct((Bp, 2), jnp.float32),
        grid=grid,
        in_specs=[
            pl.BlockSpec((TB, F * T * A), row),      # x slab
            pl.BlockSpec((TB, A + 1), row),          # action
            pl.BlockSpec(W1.shape, rep),
            pl.BlockSpec(b1.shape, rep),
            pl.BlockSpec(W2.shape, rep),
            pl.BlockSpec(b2.shape, rep),
            pl.BlockSpec(wphi.shape, rep),
            pl.BlockSpec(ww0.shape, rep),
            pl.BlockSpec(wact.shape, rep),
            pl.BlockSpec(b34.shape, rep),
        ],
        out_specs=pl.BlockSpec((TB, 2), row),
        compiler_params=pltpu.CompilerParams(
            dimension_semantics=("parallel",),
            vmem_limit_bytes=32 * 1024 * 1024),
        cost_estimate=pl.CostEstimate(flops=int(flops),
                                      transcendentals=int(2 * Bp),
                                      bytes_accessed=int(bytes_accessed)),
    )(xslab, act, W1, b1, W2, b2, wphi, ww0, wact, b34)
    return out[:B]


# ----------------------------------------------------------------------------
# Pure-JAX mirror of the PyTorch forward (NCHW), for verification.
# ----------------------------------------------------------------------------
def reference_forward(x, action, params):
    conv1_w, conv1_b, conv2_w, conv2_b, l3_w, l3_b, l4_w, l4_b = params
    B = x.shape[0]
    T2 = conv2_w.shape[2]
    dn = ('NCHW', 'OIHW', 'NCHW')
    w0 = x[:, :1, :1, :]
    xc = x[:, :, 1:, :]
    phi1 = jax.nn.relu(
        lax.conv_general_dilated(xc, conv1_w, (1, 1), 'VALID',
                                 dimension_numbers=dn)
        + conv1_b[None, :, None, None])
    phi2 = jax.nn.relu(
        lax.conv_general_dilated(phi1, conv2_w, (T2, 1), 'VALID',
                                 dimension_numbers=dn)
        + conv2_b[None, :, None, None])
    act = action[:, None, None, 1:]
    h = jnp.concatenate([phi2, w0, act], axis=1)
    hf = h.reshape(B, -1)
    mu = hf @ l3_w.T + l3_b
    var = jax.nn.softplus(hf @ l4_w.T + l4_b)
    return jnp.concatenate([mu, var], axis=1)


if __name__ == "__main__":
    # state_dim = (features=4, window=8, assets=4); action_dim = assets + 1 = 5
    F, T, A = 4, 8, 4
    action_dim = A + 1
    KT = 3
    T2 = T - 1 - 2          # stride_time
    H2, H1 = 16, 32

    key = jax.random.PRNGKey(0)
    ks = jax.random.split(key, 14)

    # Deterministic synthetic parameters (PyTorch parameter shapes).
    conv1_w = 0.2 * jax.random.normal(ks[2], (H2, F, KT, 1), jnp.float32)
    conv1_b = 0.1 * jax.random.normal(ks[3], (H2,), jnp.float32)
    conv2_w = 0.2 * jax.random.normal(ks[4], (H1, H2, T2, 1), jnp.float32)
    conv2_b = 0.1 * jax.random.normal(ks[5], (H1,), jnp.float32)
    l3_w = 0.2 * jax.random.normal(ks[6], (1, (H1 + 2) * A), jnp.float32)
    l3_b = 0.1 * jax.random.normal(ks[7], (1,), jnp.float32)
    l4_w = 0.2 * jax.random.normal(ks[8], (1, (H1 + 2) * A), jnp.float32)
    l4_b = 0.1 * jax.random.normal(ks[9], (1,), jnp.float32)
    params = (conv1_w, conv1_b, conv2_w, conv2_b, l3_w, l3_b, l4_w, l4_b)

    # Parameter re-layout happens once, outside the per-forward path.
    prepared, dims = prepare_critic_params(params)
    fwd = jax.jit(functools.partial(critic_forward, dims=dims))

    # Small batch (degenerates to 2 x 16-row tiles) and a non-divisible batch
    # that exercises the padded multi-tile path.
    for xkey, akey, B in ((ks[0], ks[1], 2), (ks[10], ks[11], 50)):
        x = jax.random.normal(xkey, (B, F, T, A), jnp.float32)
        action = jax.random.normal(akey, (B, action_dim), jnp.float32)
        out = jax.block_until_ready(fwd(x, action, prepared=prepared))
        ref = reference_forward(x, action, params)
        assert out.shape == (B, 2), out.shape
        # bf16 activations/weights with f32 accumulation -> modest tolerance.
        assert jnp.allclose(out, ref, atol=5e-2, rtol=5e-2), (B, out, ref)
    print("KERNEL_OK")
</pallas_src>

<mosaic_0001>
module attributes {stable_mosaic.version = 11 : i64} {
  func.func @_critic_kernel(%arg0: i32, %arg1: memref<16x128xbf16, #tpu.memory_space<vmem>>, %arg2: memref<16x5xbf16, #tpu.memory_space<vmem>>, %arg3: memref<128x320xbf16, #tpu.memory_space<vmem>>, %arg4: memref<1x320xf32, #tpu.memory_space<vmem>>, %arg5: memref<320x128xbf16, #tpu.memory_space<vmem>>, %arg6: memref<1x128xf32, #tpu.memory_space<vmem>>, %arg7: memref<128x2xbf16, #tpu.memory_space<vmem>>, %arg8: memref<128x2xbf16, #tpu.memory_space<vmem>>, %arg9: memref<5x2xbf16, #tpu.memory_space<vmem>>, %arg10: memref<1x2xf32, #tpu.memory_space<vmem>>, %arg11: memref<16x2xf32, #tpu.memory_space<vmem>>) attributes {dimension_semantics = [#tpu.dimension_semantics<parallel>], iteration_bounds = array<i64: 2>, scalar_prefetch = 0 : i64, scratch_operands = 0 : i64, tpu.core_type = #tpu.core_type<tc>, window_params = [{transform_indices = @transform_0, window_bounds = array<i64: 16, 128>}, {transform_indices = @transform_1, window_bounds = array<i64: 16, 5>}, {pipeline_mode = #tpu.pipeline_mode<synchronous>, transform_indices = @transform_2, window_bounds = array<i64: 128, 320>}, {pipeline_mode = #tpu.pipeline_mode<synchronous>, transform_indices = @transform_3, window_bounds = array<i64: 1, 320>}, {pipeline_mode = #tpu.pipeline_mode<synchronous>, transform_indices = @transform_4, window_bounds = array<i64: 320, 128>}, {pipeline_mode = #tpu.pipeline_mode<synchronous>, transform_indices = @transform_5, window_bounds = array<i64: 1, 128>}, {pipeline_mode = #tpu.pipeline_mode<synchronous>, transform_indices = @transform_6, window_bounds = array<i64: 128, 2>}, {pipeline_mode = #tpu.pipeline_mode<synchronous>, transform_indices = @transform_7, window_bounds = array<i64: 128, 2>}, {pipeline_mode = #tpu.pipeline_mode<synchronous>, transform_indices = @transform_8, window_bounds = array<i64: 5, 2>}, {pipeline_mode = #tpu.pipeline_mode<synchronous>, transform_indices = @transform_9, window_bounds = array<i64: 1, 2>}, {transform_indices = @transform_10, window_bounds = array<i64: 16, 2>}]} {
    %c0 = arith.constant 0 : index
    %c0_0 = arith.constant 0 : index
    %0 = vector.load %arg1[%c0, %c0_0] : memref<16x128xbf16, #tpu.memory_space<vmem>>, vector<16x128xbf16>
    %c0_1 = arith.constant 0 : index
    %c0_2 = arith.constant 0 : index
    %1 = vector.load %arg3[%c0_1, %c0_2] : memref<128x320xbf16, #tpu.memory_space<vmem>>, vector<128x320xbf16>
    %cst = arith.constant dense<0.000000e+00> : vector<16x320xf32>
    %2 = tpu.matmul %0, %1, %cst {dimension_numbers = #tpu.dot_dimension_numbers<[1], [0], [0], [1], [0, 0, 1, 1], [], []>} : vector<16x128xbf16>, vector<128x320xbf16>, vector<16x320xf32> -> vector<16x320xf32>
    %c0_3 = arith.constant 0 : index
    %c0_4 = arith.constant 0 : index
    %3 = vector.load %arg4[%c0_3, %c0_4] : memref<1x320xf32, #tpu.memory_space<vmem>>, vector<1x320xf32>
    %4 = vector.broadcast %3 : vector<1x320xf32> to vector<16x320xf32>
    %5 = arith.addf %2, %4 : vector<16x320xf32>
    %cst_5 = arith.constant 0.000000e+00 : f32
    %6 = vector.broadcast %cst_5 : f32 to vector<16x320xf32>
    %7 = arith.maximumf %5, %6 : vector<16x320xf32>
    %8 = arith.truncf %7 : vector<16x320xf32> to vector<16x320xbf16>
    %c0_6 = arith.constant 0 : index
    %c0_7 = arith.constant 0 : index
    %9 = vector.load %arg5[%c0_6, %c0_7] : memref<320x128xbf16, #tpu.memory_space<vmem>>, vector<320x128xbf16>
    %cst_8 = arith.constant dense<0.000000e+00> : vector<16x128xf32>
    %10 = tpu.matmul %8, %9, %cst_8 {dimension_numbers = #tpu.dot_dimension_numbers<[1], [0], [0], [1], [0, 0, 1, 1], [], []>} : vector<16x320xbf16>, vector<320x128xbf16>, vector<16x128xf32> -> vector<16x128xf32>
    %c0_9 = arith.constant 0 : index
    %c0_10 = arith.constant 0 : index
    %11 = vector.load %arg6[%c0_9, %c0_10] : memref<1x128xf32, #tpu.memory_space<vmem>>, vector<1x128xf32>
    %12 = vector.broadcast %11 : vector<1x128xf32> to vector<16x128xf32>
    %13 = arith.addf %10, %12 : vector<16x128xf32>
    %cst_11 = arith.constant 0.000000e+00 : f32
    %14 = vector.broadcast %cst_11 : f32 to vector<16x128xf32>
    %15 = arith.maximumf %13, %14 : vector<16x128xf32>
    %16 = arith.truncf %15 : vector<16x128xf32> to vector<16x128xbf16>
    %c0_12 = arith.constant 0 : index
    %c0_13 = arith.constant 0 : index
    %17 = vector.load %arg7[%c0_12, %c0_13] : memref<128x2xbf16, #tpu.memory_space<vmem>>, vector<128x2xbf16>
    %cst_14 = arith.constant dense<0.000000e+00> : vector<16x2xf32>
    %18 = tpu.matmul %16, %17, %cst_14 {dimension_numbers = #tpu.dot_dimension_numbers<[1], [0], [0], [1], [0, 0, 1, 1], [], []>} : vector<16x128xbf16>, vector<128x2xbf16>, vector<16x2xf32> -> vector<16x2xf32>
    %c0_15 = arith.constant 0 : index
    %c0_16 = arith.constant 0 : index
    %19 = vector.load %arg8[%c0_15, %c0_16] : memref<128x2xbf16, #tpu.memory_space<vmem>>, vector<128x2xbf16>
    %cst_17 = arith.constant dense<0.000000e+00> : vector<16x2xf32>
    %20 = tpu.matmul %0, %19, %cst_17 {dimension_numbers = #tpu.dot_dimension_numbers<[1], [0], [0], [1], [0, 0, 1, 1], [], []>} : vector<16x128xbf16>, vector<128x2xbf16>, vector<16x2xf32> -> vector<16x2xf32>
    %21 = arith.addf %18, %20 : vector<16x2xf32>
    %c0_18 = arith.constant 0 : index
    %c0_19 = arith.constant 0 : index
    %22 = vector.load %arg2[%c0_18, %c0_19] : memref<16x5xbf16, #tpu.memory_space<vmem>>, vector<16x5xbf16>
    %c0_20 = arith.constant 0 : index
    %c0_21 = arith.constant 0 : index
    %23 = vector.load %arg9[%c0_20, %c0_21] : memref<5x2xbf16, #tpu.memory_space<vmem>>, vector<5x2xbf16>
    %cst_22 = arith.constant dense<0.000000e+00> : vector<16x2xf32>
    %24 = tpu.matmul %22, %23, %cst_22 {dimension_numbers = #tpu.dot_dimension_numbers<[1], [0], [0], [1], [0, 0, 1, 1], [], []>} : vector<16x5xbf16>, vector<5x2xbf16>, vector<16x2xf32> -> vector<16x2xf32>
    %25 = arith.addf %21, %24 : vector<16x2xf32>
    %c0_23 = arith.constant 0 : index
    %c0_24 = arith.constant 0 : index
    %26 = vector.load %arg10[%c0_23, %c0_24] : memref<1x2xf32, #tpu.memory_space<vmem>>, vector<1x2xf32>
    %27 = vector.broadcast %26 : vector<1x2xf32> to vector<16x2xf32>
    %28 = arith.addf %25, %27 : vector<16x2xf32>
    %29 = tpu.iota {dimensions = array<i32: 1>} : vector<16x2xi32>
    %c1_i32 = arith.constant 1 : i32
    %30 = vector.broadcast %c1_i32 : i32 to vector<16x2xi32>
    %31 = arith.cmpi eq, %29, %30 : vector<16x2xi32>
    %cst_25 = arith.constant 0.000000e+00 : f32
    %32 = vector.broadcast %cst_25 : f32 to vector<16x2xf32>
    %33 = arith.maximumf %28, %32 : vector<16x2xf32>
    %34 = vector.broadcast %cst_25 : f32 to vector<16x2xf32>
    %35 = arith.subf %28, %34 : vector<16x2xf32>
    %36 = arith.cmpf one, %35, %35 : vector<16x2xf32>
    %37 = vector.broadcast %cst_25 : f32 to vector<16x2xf32>
    %38 = arith.addf %28, %37 : vector<16x2xf32>
    %39 = math.absf %35 : vector<16x2xf32>
    %cst_26 = arith.constant 0.000000e+00 : f32
    %40 = vector.broadcast %cst_26 : f32 to vector<16x2xf32>
    %41 = arith.subf %40, %39 : vector<16x2xf32>
    %42 = math.exp %41 : vector<16x2xf32>
    %43 = math.log1p %42 : vector<16x2xf32>
    %44 = arith.addf %33, %43 : vector<16x2xf32>
    %45 = arith.select %36, %38, %44 : vector<16x2xi1>, vector<16x2xf32>
    %46 = arith.select %31, %45, %28 : vector<16x2xi1>, vector<16x2xf32>
    %c0_27 = arith.constant 0 : index
    %c0_28 = arith.constant 0 : index
    %47 = vector.load %arg11[%c0_27, %c0_28] : memref<16x2xf32, #tpu.memory_space<vmem>>, vector<16x2xf32>
    tpu.vector_store %arg11[%c0_27, %c0_28], %46 {strides = array<i32>} : memref<16x2xf32, #tpu.memory_space<vmem>>, vector<16x2xf32>,
    return
  }
  func.func @transform_0(%arg0: i32) -> (i32, i32) {
    %c0_i32 = arith.constant 0 : i32
    %c0_i32_0 = arith.constant 0 : i32
    return %arg0, %c0_i32 : i32, i32
  }
  func.func @transform_1(%arg0: i32) -> (i32, i32) {
    %c0_i32 = arith.constant 0 : i32
    %c0_i32_0 = arith.constant 0 : i32
    return %arg0, %c0_i32 : i32, i32
  }
  func.func @transform_2(%arg0: i32) -> (i32, i32) {
    %c0_i32 = arith.constant 0 : i32
    %c0_i32_0 = arith.constant 0 : i32
    %c0_i32_1 = arith.constant 0 : i32
    return %c0_i32, %c0_i32_0 : i32, i32
  }
  func.func @transform_3(%arg0: i32) -> (i32, i32) {
    %c0_i32 = arith.constant 0 : i32
    %c0_i32_0 = arith.constant 0 : i32
    %c0_i32_1 = arith.constant 0 : i32
    return %c0_i32, %c0_i32_0 : i32, i32
  }
  func.func @transform_4(%arg0: i32) -> (i32, i32) {
    %c0_i32 = arith.constant 0 : i32
    %c0_i32_0 = arith.constant 0 : i32
    %c0_i32_1 = arith.constant 0 : i32
    return %c0_i32, %c0_i32_0 : i32, i32
  }
  func.func @transform_5(%arg0: i32) -> (i32, i32) {
    %c0_i32 = arith.constant 0 : i32
    %c0_i32_0 = arith.constant 0 : i32
    %c0_i32_1 = arith.constant 0 : i32
    return %c0_i32, %c0_i32_0 : i32, i32
  }
  func.func @transform_6(%arg0: i32) -> (i32, i32) {
    %c0_i32 = arith.constant 0 : i32
    %c0_i32_0 = arith.constant 0 : i32
    %c0_i32_1 = arith.constant 0 : i32
    return %c0_i32, %c0_i32_0 : i32, i32
  }
  func.func @transform_7(%arg0: i32) -> (i32, i32) {
    %c0_i32 = arith.constant 0 : i32
    %c0_i32_0 = arith.constant 0 : i32
    %c0_i32_1 = arith.constant 0 : i32
    return %c0_i32, %c0_i32_0 : i32, i32
  }
  func.func @transform_8(%arg0: i32) -> (i32, i32) {
    %c0_i32 = arith.constant 0 : i32
    %c0_i32_0 = arith.constant 0 : i32
    %c0_i32_1 = arith.constant 0 : i32
    return %c0_i32, %c0_i32_0 : i32, i32
  }
  func.func @transform_9(%arg0: i32) -> (i32, i32) {
    %c0_i32 = arith.constant 0 : i32
    %c0_i32_0 = arith.constant 0 : i32
    %c0_i32_1 = arith.constant 0 : i32
    return %c0_i32, %c0_i32_0 : i32, i32
  }
  func.func @transform_10(%arg0: i32) -> (i32, i32) {
    %c0_i32 = arith.constant 0 : i32
    %c0_i32_0 = arith.constant 0 : i32
    return %arg0, %c0_i32 : i32, i32
  }
}

</mosaic_0001>

<bundles_post_ra>
// kernel: critic_forward.1
= control target key start
LH: loop header
LB: loop body
LE: loop exit
PB: predicated region body
PF: predicated region fallthrough
CT: control target
= control target key end

     0   :  { %s1683_s13 = smov 0   ;;  %s1950_s0 = inlined_call_operand.vmem [shape: bf16[32,128], index: 0, kind: input, shape index: {}]   ;;  %s1951_s1 = inlined_call_operand.vmem [shape: bf16[32,5], index: 1, kind: input, shape index: {}]   ;;  %s1952_s2 = inlined_call_operand.vmem [shape: bf16[128,320], index: 2, kind: input, shape index: {}]   ;;  %s1953_s3 = inlined_call_operand.vmem [shape: f32[1,320], index: 3, kind: input, shape index: {}]   ;;  %s1954_s4 = inlined_call_operand.vmem [shape: bf16[320,128], index: 4, kind: input, shape index: {}]   ;;  %s1955_s5 = inlined_call_operand.vmem [shape: f32[1,128], index: 5, kind: input, shape index: {}]   ;;  %s1956_s6 = inlined_call_operand.vmem [shape: bf16[128,2], index: 6, kind: input, shape index: {}]   ;;  %s1957_s7 = inlined_call_operand.vmem [shape: bf16[128,2], index: 7, kind: input, shape index: {}]   ;;  %s1958_s8 = inlined_call_operand.vmem [shape: bf16[5,2], index: 8, kind: input, shape index: {}]   ;;  %s1959_s9 = inlined_call_operand.vmem [shape: f32[1,2], index: 9, kind: input, shape index: {}]   ;;  %s1960_s10 = inlined_call_operand.vmem [shape: f32[32,2], index: 10, kind: output, shape index: {}]  }
   0x1 LB: > { %s1313_s14 = sadd.s32 4294967295, %s1622_s13   ;;  %p1317_p0 = scmp.ge.s32.totalorder %s1622_s13, 1  ;;  %s1622_s13 = sphi %s1683_s13, %s20_s13  }
   0x2   : > { %p324_p1 = scmp.lt.s32.totalorder %s1622_s13, 3 }
   0x4   : > { %p325_p2 = pnand %p1317_p0, %p324_p1 }
   0x5   : > { %s1318_s21 = sshll.u32 (!%p325_p2), %s1313_s14, 1 }
   0x6   : > { %328 = sbr.rel (%p325_p2) target bundleno = 707 (0x2c3), region = 60  ;;  %p368_p3 = scmp.lt.s32.totalorder (!%p325_p2), %s1318_s21, 3 }
   0xb   : > { %v1538_v0 = vld [vmem:[%s1952_s2 + $0xac] ss:$12 sps:$4 sm:$0xff]   ;;  %v1624_v1 = vmov 0.0   ;;  %v1540_v2 = vld [vmem:[%s1952_s2 + $0xb0] ss:$12 sps:$4 sm:$0xff]   ;;  %vm1625_vm0 = vmmov 0   ;;  %v422_v47 = vlaneseq }
   0xc   : > { %1448 = vmatprep.subr.bf16.mxu1 %v1624_v1  ;;  %1464 = vmatprep.mubr.msk.bf16.mxu1 %vm1625_vm0, %v1624_v1  ;;  %v1541_v3 = vld [vmem:[%s1952_s2 + $0xa8] ss:$12 sps:$4 sm:$0xff]   ;;  %v1626_v5 = vmov 0   ;;  %v1544_v6 = vld [vmem:[%s1952_s2 + $0x98] ss:$12 sps:$4 sm:$0xff]   ;;  %s1962_s21 = smov (!%p368_p3, %s1318_s21), 3 }
   0xd   : > { %571 = vmatprep.subr.bf16.mxu0 %v1538_v0  ;;  %1449 = vmatpush3.bf16.msra.mxu1 %v1540_v2  ;;  %v1542_v4 = vld [vmem:[%s1952_s2 + $0x94] ss:$12 sps:$4 sm:$0xff]   ;;  %v1545_v7 = vld [vmem:[%s1952_s2 + $0x90] ss:$12 sps:$4 sm:$0xff]   ;;  %v1549_v10 = vld [vmem:[%s1952_s2 + $0x78] ss:$12 sps:$4 sm:$0xff]  }
   0xe   : > { %603 = vmatprep.mubr.bf16.mxu0 %v1626_v5  ;;  %572 = vmatpush1.bf16.msra.mxu0 %v1541_v3  ;;  %v1546_v8 = vld [vmem:[%s1952_s2 + $0x7c] ss:$12 sps:$4 sm:$0xff]   ;;  %v1548_v9 = vld [vmem:[%s1952_s2 + $0x80] ss:$12 sps:$4 sm:$0xff]   ;;  %v1550_v11 = vld [vmem:[%s1952_s2 + $0x64] ss:$12 sps:$4 sm:$0xff]  }
   0xf   : > { %1450 = vmatprep.subr.bf16.mxu1 %v1624_v1  ;;  %573 = vmatprep.subr.bf16.mxu0 %v1542_v4  ;;  %v1552_v12 = vld [vmem:[%s1952_s2 + $0x68] ss:$12 sps:$4 sm:$0xff]   ;;  %v1553_v13 = vld [vmem:[%s1952_s2 + $0x60] ss:$12 sps:$4 sm:$0xff]   ;;  %s1319_s24 = sshll.u32 %s1962_s21, 2  ;;  %v1572_v27 = vld [vmem:[%s1954_s4 + $0x78] sm:$0xff]  }
  0x10   : > { %v1554_v14 = vld [vmem:[%s1952_s2 + $0x4c] ss:$12 sps:$4 sm:$0xff]   ;;  %v1556_v15 = vld [vmem:[%s1952_s2 + $0x50] ss:$12 sps:$4 sm:$0xff]   ;;  %v1557_v16 = vld [vmem:[%s1952_s2 + $0x48] ss:$12 sps:$4 sm:$0xff]   ;;  %s371_s14 = scalar_lea.vmem %s1950_s0, %s1319_s24  ;;  %s1755_s17 = scalar_lea.vmem %s1951_s1, %s1319_s24 }
  0x11   : > { %1451 = vmatpush3.bf16.msra.mxu1 %v1544_v6  ;;  %v1558_v17 = vld [vmem:[%s1952_s2 + $0x34] ss:$12 sps:$4 sm:$0xff]   ;;  %v1560_v18 = vld [vmem:[%s1952_s2 + $0x38] ss:$12 sps:$4 sm:$0xff]   ;;  %v1561_v19 = vld [vmem:[%s1952_s2 + $0x30] ss:$12 sps:$4 sm:$0xff]  }
  0x12   : > { %574 = vmatpush1.bf16.msra.mxu0 %v1545_v7  ;;  %1452 = vmatprep.subr.bf16.mxu1 %v1624_v1  ;;  %v1562_v20 = vld [vmem:[%s1952_s2 + $0x1c] ss:$12 sps:$4 sm:$0xff]   ;;  %v1564_v21 = vld [vmem:[%s1952_s2 + $0x20] ss:$12 sps:$4 sm:$0xff]   ;;  %v1565_v22 = vld [vmem:[%s1952_s2 + $0x18] ss:$12 sps:$4 sm:$0xff]  }
  0x13   : > { %575 = vmatprep.subr.bf16.mxu0 %v1546_v8  ;;  %v1566_v23 = vld [vmem:[%s1952_s2 + $0x4] ss:$12 sps:$4 sm:$0xff]   ;;  %v1568_v24 = vld [vmem:[%s1952_s2 + $0x8] ss:$12 sps:$4 sm:$0xff]   ;;  %v1569_v25 = vld [vmem:[%s1952_s2] ss:$12 sps:$4 sm:$0xff]  }
  0x14   : > { %v1784_v26 = vld [vmem:[%s371_s14] sm:$0xff]   ;;  %v1573_v28 = vld [vmem:[%s1954_s4 + $0x38] sm:$0xff]   ;;  %v1574_v30 = vld [vmem:[%s1954_s4 + $0x70] sm:$0xff]   ;;  %v423_v48 = vshrl.u32 %v422_v47, 7  ;;  %vm831_vm1 = vcmask 523264   ;;  %vm1142_vm2 = vcmask 1041408  }
  0x15   : > { %1453 = vmatpush3.bf16.msra.mxu1 %v1548_v9  ;;  %v1580_v29 = vld [vmem:[%s1954_s4 + $0x98] sm:$0xff]   ;;  %v1575_v31 = vld [vmem:[%s1954_s4 + $0x30] sm:$0xff]   ;;  %v1576_v32 = vld [vmem:[%s1954_s4 + $0x68] sm:$0xff]   ;;  %vm1143_vm3 = vcmask 1042432   ;;  %vm1138_vm4 = vcmask 39936   ;;  %s1323_s29 = sshll.u32 %s1962_s21, 3 }
  0x16   : > { %576 = vmatpush1.bf16.msra.mxu0 %v1549_v10  ;;  %1454 = vmatprep.subr.bf16.mxu1 %v1624_v1  ;;  %v1577_v33 = vld [vmem:[%s1954_s4 + $0x28] sm:$0xff]   ;;  %v1578_v34 = vld [vmem:[%s1954_s4 + $0x60] sm:$0xff]   ;;  %v1581_v36 = vld [vmem:[%s1954_s4 + $0x58] sm:$0xff]   ;;  %v432_v49 = vsub.s32 2, %v423_v48  ;;  %v428_v52 = vsub.s32 1, %v423_v48  ;;  %v424_v53 = vsub.s32 0, %v423_v48  ;;  %s383_s12 = scalar_lea.vmem %s1960_s10, %s1323_s29 }
  0x17   : > { %577 = vmatprep.subr.bf16.mxu0 %v1550_v11  ;;  %v1579_v35 = vld [vmem:[%s1954_s4 + $0x20] sm:$0xff]   ;;  %v1582_v37 = vld [vmem:[%s1954_s4 + $0x18] sm:$0xff]   ;;  %v1583_v38 = vld [vmem:[%s1954_s4 + $0x90] sm:$0xff]   ;;  %vm1242_vm8 = vcmask 15360  }
  0x18   : > { %v1584_v39 = vld [vmem:[%s1954_s4 + $0x50] sm:$0xff]   ;;  %v1586_v41 = vld [vmem:[%s1954_s4 + $0x88] sm:$0xff]   ;;  %v1589_v44 = vld [vmem:[%s1954_s4 + $0x80] sm:$0xff]  }
  0x19   : > { %1455 = vmatpush3.bf16.msra.mxu1 %v1552_v12  ;;  %v1585_v40 = vld [vmem:[%s1954_s4 + $0x10] sm:$0xff]   ;;  %v1587_v42 = vld [vmem:[%s1954_s4 + $0x48] sm:$0xff]   ;;  %v1590_v45 = vld [vmem:[%s1954_s4 + $0x40] sm:$0xff]  }
  0x1a   : > { %578 = vmatpush1.bf16.msra.mxu0 %v1553_v13  ;;  %1456 = vmatprep.subr.bf16.mxu1 %v1624_v1  ;;  %v1588_v43 = vld [vmem:[%s1954_s4 + $0x8] sm:$0xff]   ;;  %v1591_v46 = vld [vmem:[%s1954_s4] sm:$0xff]   ;;  %v1592_v9 = vld [vmem:[%s1957_s7 + $0x38] sm:$0xff]  }
  0x1b   : > { %579 = vmatprep.subr.bf16.mxu0 %v1554_v14  ;;  %v420_v50 = vld [vmem:[%s1953_s3] sm:$0x7] }
  0x1c   : > { %v433_v51 = vrot.slane %v420_v50, %v432_v49  ;;  %v429_v58 = vrot.slane %v420_v50, %v428_v52  ;;  %v425_v59 = vrot.slane %v420_v50, %v424_v53 }
  0x1d   : > { %1457 = vmatpush3.bf16.msra.mxu1 %v1556_v15 }
  0x1e   : > { %580 = vmatpush1.bf16.msra.mxu0 %v1557_v16  ;;  %1458 = vmatprep.subr.bf16.mxu1 %v1624_v1  ;;  %v1593_v16 = vld [vmem:[%s1957_s7 + $0x30] sm:$0xff]  }
  0x1f   : > { %581 = vmatprep.subr.bf16.mxu0 %v1558_v17  ;;  %v1596_v17 = vld [vmem:[%s1956_s6 + $0x38] sm:$0xff]  }
  0x21   : > { %1459 = vmatpush3.bf16.msra.mxu1 %v1560_v18 }
  0x22   : > { %582 = vmatpush1.bf16.msra.mxu0 %v1561_v19  ;;  %1460 = vmatprep.subr.bf16.mxu1 %v1624_v1  ;;  %v1594_v19 = vld [vmem:[%s1957_s7 + $0x28] sm:$0xff]  }
  0x23   : > { %583 = vmatprep.subr.bf16.mxu0 %v1562_v20  ;;  %v1598_v20 = vld [vmem:[%s1956_s6 + $0x30] sm:$0xff]  }
  0x25   : > { %1461 = vmatpush3.bf16.msra.mxu1 %v1564_v21  ;;  %v1595_v21 = vld [vmem:[%s1957_s7 + $0x20] sm:$0xff]  }
  0x26   : > { %584 = vmatpush1.bf16.msra.mxu0 %v1565_v22  ;;  %1462 = vmatprep.subr.bf16.mxu1 %v1624_v1  ;;  %v1600_v22 = vld [vmem:[%s1956_s6 + $0x28] sm:$0xff]  }
  0x27   : > { %585 = vmatprep.subr.bf16.mxu0 %v1566_v23  ;;  %v1597_v23 = vld [vmem:[%s1957_s7 + $0x18] sm:$0xff]  }
  0x29   : > { %1463 = vmatpush3.bf16.msra.mxu1 %v1568_v24  ;;  %v1599_v24 = vld [vmem:[%s1957_s7 + $0x10] sm:$0xff]  }
  0x2a   : > { %586 = vmatpush1.bf16.msra.mxu0 %v1569_v25  ;;  %1468 = vmatprep.subr.bf16.mxu1 %v1624_v1  ;;  %v1601_v25 = vld [vmem:[%s1957_s7 + $0x8] sm:$0xff]  }
  0x2b   : > { %1401 = vmatprep.subr.bf16.mxu0 %v1572_v27  ;;  %v1602_v27 = vld [vmem:[%s1956_s6 + $0x20] sm:$0xff]  }
  0x2c   : > { %1465 = vmatmul.mubr.bf16.vlgmr.msra.gmra.mxu1 %v1784_v26 }
  0x2d   : > { %604 = vmatmul.mubr.bf16.vlgmr.msra.gmra.mxu0 %v1784_v26  ;;  %1469 = vmatpush3.bf16.msra.mxu1 %v1580_v29  ;;  %v1604_v29 = vld [vmem:[%s1956_s6 + $0x18] sm:$0xff]  }
  0x2e   : > { %1402 = vmatpush3.bf16.msra.mxu0 %v1573_v28  ;;  %1470 = vmatprep.subr.bf16.mxu1 %v1624_v1  ;;  %v1603_v28 = vld [vmem:[%s1957_s7] sm:$0xff]  }
  0x2f   : > { %1403 = vmatprep.subr.bf16.mxu0 %v1574_v30  ;;  %1476 = vmatprep.mubr.msk.bf16.mxu1 %vm1625_vm0, %v1624_v1  ;;  %v1605_v30 = vld [vmem:[%s1956_s6 + $0x10] sm:$0xff]  }
  0x31   : > { %1471 = vmatpush3.bf16.msra.mxu1 %v1583_v38 }
  0x32   : > { %1404 = vmatpush3.bf16.msra.mxu0 %v1575_v31  ;;  %1472 = vmatprep.subr.bf16.mxu1 %v1624_v1  ;;  %v1627_v31 = vmov 65535  }
  0x33   : > { %1405 = vmatprep.subr.bf16.mxu0 %v1576_v32  ;;  %v1144_v32 = vsel %vm1142_vm2, 4294967295, %v1627_v31 }
  0x35   : > { %1473 = vmatpush3.bf16.msra.mxu1 %v1586_v41 }
  0x36   : > { %1406 = vmatpush3.bf16.msra.mxu0 %v1577_v33  ;;  %1474 = vmatprep.subr.bf16.mxu1 %v1624_v1  ;;  %v1132_v33 = vld [vmem:[%s1958_s8] sm:$0x7] }
  0x37   : > { %1407 = vmatprep.subr.bf16.mxu0 %v1578_v34  ;;  %v1145_v34 = vsel %vm1143_vm3, %v1144_v32, 0 }
  0x39   : > { %1475 = vmatpush3.bf16.msra.mxu1 %v1589_v44 }
  0x3a   : > { %1408 = vmatpush3.bf16.msra.mxu0 %v1579_v35  ;;  %1480 = vmatprep.subr.bf16.mxu1 %v1624_v1  ;;  %v1606_v35 = vld [vmem:[%s1956_s6 + $0x8] sm:$0xff]  }
  0x3b   : > { %1409 = vmatprep.subr.bf16.mxu0 %v1581_v36  ;;  %v1571_v36 = vld [vmem:[%s1755_s17] sm:$0xff]  }
  0x3e   : > { %1410 = vmatpush3.bf16.msra.mxu0 %v1582_v37  ;;  %v1607_v37 = vld [vmem:[%s1956_s6] sm:$0xff]  }
  0x3f   : > { %1411 = vmatprep.subr.bf16.mxu0 %v1584_v39 }
  0x42   : > { %1412 = vmatpush3.bf16.msra.mxu0 %v1585_v40 }
  0x43   : > { %1413 = vmatprep.subr.bf16.mxu0 %v1587_v42  ;;  %v1349_v42 = vld [vmem:[%s1955_s5] ss:$0 sm:$0xff] }
  0x46   : > { %1414 = vmatpush3.bf16.msra.mxu0 %v1588_v43 }
  0x47   : > { %1415 = vmatprep.subr.bf16.mxu0 %v1590_v45 }
  0x4a   : > { %1416 = vmatpush3.bf16.msra.mxu0 %v1591_v46 }
  0x4b   : > { %1500 = vmatprep.subr.bf16.mxu0 %v1624_v1 }
  0xec   : > { %v648_v54 = vpop.f32.mrf.mxu1 }
  0xed   : > { %v649_v55 = vadd.f32 %v648_v54, %v433_v51  ;;  %v605_v56 = vpop.f32.mrf.mxu0 }
  0xee   : > { %v1466_v57 = vpop.f32.mrf.mxu1  ;;  %v606_v5 = vadd.f32 %v605_v56, %v425_v59 }
  0xef   : > { %v607_v60 = vpop.f32.mrf.mxu0  ;;  %v657_v62 = vmax.f32 %v649_v55, 0.0 }
  0xf0   : > { %v651_v61 = vpop.f32.mrf.mxu1  ;;  %v608_v2 = vadd.f32 %v607_v60, %v429_v58  ;;  %v655_v14 = vmax.f32 %v606_v5, 0.0 }
  0xf1   : > { %v652_v63 = vadd.f32 %v651_v61, %v433_v51  ;;  %v609_v0 = vpop.f32.mrf.mxu0 }
  0xf2   : > { %v610_v3 = vadd.f32 %v609_v0, %v425_v59  ;;  %v1467_v4 = vpop.f32.mrf.mxu1  ;;  %v656_v12 = vmax.f32 %v608_v2, 0.0 }
  0xf3   : > { %v660_v6 = vmax.f32 %v652_v63, 0.0  ;;  %v611_v7 = vpop.f32.mrf.mxu0 }
  0xf4   : > { %v612_v8 = vadd.f32 %v611_v7, %v429_v58  ;;  %v658_v11 = vmax.f32 %v610_v3, 0.0  ;;  %v1389_v3 = vld [vmem:[%s1959_s9] ss:$0 sm:$0xff] }
  0xf5   : > { %v663_v10 = vpack.c.bf16 %v660_v6, %v657_v62 }
  0xf6   : > { %v659_v13 = vmax.f32 %v612_v8, 0.0  ;;  %v661_v18 = vpack.c.bf16 %v658_v11, %v655_v14 }
  0xf7   : > { %1477 = vmatmul.mubr.msk.bf16.vlgmr.msra.gmra.mxu1 %vm831_vm1, %v663_v10 }
  0xf8   : > { %v662_v15 = vpack.c.bf16 %v659_v13, %v656_v12  ;;  %1481 = vmatpush3.bf16.msra.mxu1 %v1592_v9  ;;  %1496 = vmatprep.mubr.msk.bf16.mxu1 %vm1625_vm0, %v1624_v1 }
  0xf9   : > { %1482 = vmatprep.subr.bf16.mxu1 %v1624_v1 }
  0xfa   : > { %867 = vmatprep.mubr.bf16.mxu0 %v662_v15 }
  0xfb   : > { %868 = vmatmul.mubr.bf16.vlgmr.msra.gmra.mxu0 %v661_v18 }
  0xfc   : > { %1483 = vmatpush3.bf16.msra.mxu1 %v1593_v16  ;;  %1501 = vmatpush3.bf16.msra.mxu0 %v1596_v17 }
  0xfd   : > { %1484 = vmatprep.subr.bf16.mxu1 %v1624_v1  ;;  %1502 = vmatprep.subr.bf16.mxu0 %v1624_v1 }
  0xfe   : > { %1516 = vmatprep.mubr.msk.bf16.mxu0 %vm1625_vm0, %v1624_v1 }
 0x100   : > { %1485 = vmatpush3.bf16.msra.mxu1 %v1594_v19  ;;  %1503 = vmatpush3.bf16.msra.mxu0 %v1598_v20 }
 0x101   : > { %1486 = vmatprep.subr.bf16.mxu1 %v1624_v1  ;;  %1504 = vmatprep.subr.bf16.mxu0 %v1624_v1 }
 0x104   : > { %1487 = vmatpush3.bf16.msra.mxu1 %v1595_v21  ;;  %1505 = vmatpush3.bf16.msra.mxu0 %v1600_v22 }
 0x105   : > { %1488 = vmatprep.subr.bf16.mxu1 %v1624_v1  ;;  %1506 = vmatprep.subr.bf16.mxu0 %v1624_v1 }
 0x108   : > { %1489 = vmatpush3.bf16.msra.mxu1 %v1597_v23  ;;  %1507 = vmatpush3.bf16.msra.mxu0 %v1602_v27 }
 0x109   : > { %1490 = vmatprep.subr.bf16.mxu1 %v1624_v1  ;;  %1508 = vmatprep.subr.bf16.mxu0 %v1624_v1 }
 0x10c   : > { %1491 = vmatpush3.bf16.msra.mxu1 %v1599_v24  ;;  %1509 = vmatpush3.bf16.msra.mxu0 %v1604_v29 }
 0x10d   : > { %1492 = vmatprep.subr.bf16.mxu1 %v1624_v1  ;;  %1510 = vmatprep.subr.bf16.mxu0 %v1624_v1 }
 0x110   : > { %1493 = vmatpush3.bf16.msra.mxu1 %v1601_v25  ;;  %1511 = vmatpush3.bf16.msra.mxu0 %v1605_v30 }
 0x111   : > { %1494 = vmatprep.subr.bf16.mxu1 %v1624_v1  ;;  %1512 = vmatprep.subr.bf16.mxu0 %v1624_v1 }
 0x114   : > { %1495 = vmatpush3.bf16.msra.mxu1 %v1603_v28  ;;  %1513 = vmatpush3.bf16.msra.mxu0 %v1606_v35  ;;  %v1202_v28 = vand.u32 127, %v422_v47 }
 0x115   : > { %1520 = vmatprep.subr.bf16.mxu1 %v1624_v1  ;;  %1514 = vmatprep.subr.bf16.mxu0 %v1624_v1 }
 0x116   : > { %vm1203_vm6 = vcmp.eq.s32.totalorder %v1202_v28, 1 }
 0x117   : > { %1497 = vmatmul.mubr.bf16.vlgmr.msra.gmra.mxu1 %v1784_v26  ;;  %v1147_v26 = vand.u32 %v1145_v34, %v1132_v33 }
 0x118   : > { %1522 = vmatprep.mubr.msk.bf16.mxu1 %vm1625_vm0, %v1624_v1  ;;  %1515 = vmatpush3.bf16.msra.mxu0 %v1607_v37 }
 0x119   : > { %1521 = vmatpush3.bf16.msra.mxu1 %v1147_v26 }
 0x11f   : > { %1523 = vmatmul.mubr.msk.bf16.vlgmr.msra.gmra.mxu1 %vm1138_vm4, %v1571_v36 }
 0x1b7   : > { %v910_v38 = vpop.f32.mrf.mxu1 }
 0x1b9   : > { %v1478_v39 = vpop.f32.mrf.mxu1 }
 0x1bb   : > { %v1417_v40 = vpop.f32.mrf.mxu0  ;;  %v913_v41 = vpop.f32.mrf.mxu1 }
 0x1bd   : > { %v1418_v43 = vpop.f32.mrf.mxu0  ;;  %v1479_v44 = vpop.f32.mrf.mxu1 }
 0x1be   : > { %v1419_v45 = vadd.f32 %v1418_v43, %v1417_v40 }
 0x1bf   : > { %v1420_v46 = vpop.f32.mrf.mxu0 }
 0x1c0   : > { %v870_v1 = vadd.f32 %v1419_v45, %v1349_v42 }
 0x1c1   : > { %v1421_v48 = vpop.f32.mrf.mxu0 }
 0x1c2   : > { %v1422_v49 = vadd.f32 %v1421_v48, %v1420_v46  ;;  %v911_v50 = vadd.f32 %v910_v38, %v870_v1 }
 0x1c4   : > { %v873_v51 = vadd.f32 %v1422_v49, %v1349_v42  ;;  %v917_v53 = vmax.f32 %v911_v50, 0.0 }
 0x1c6   : > { %v914_v52 = vadd.f32 %v913_v41, %v873_v51 }
 0x1c8   : > { %v918_v54 = vmax.f32 %v914_v52, 0.0 }
 0x1ca   : > { %v919_v55 = vpack.c.bf16 %v918_v54, %v917_v53 }
 0x1cc   : > { %1517 = vmatmul.mubr.bf16.vlgmr.msra.gmra.mxu0 %v919_v55 }
 0x1d7   : > { %v1034_v56 = vpop.f32.mrf.mxu1 }
 0x1d9   : > { %v1498_v57 = vpop.f32.mrf.mxu1 }
 0x1db   : > { %v1037_v58 = vpop.f32.mrf.mxu1 }
 0x1dd   : > { %v1499_v59 = vpop.f32.mrf.mxu1 }
 0x1df   : > { %v1183_v60 = vpop.f32.mrf.mxu1 }
 0x1e1   : > { %v1524_v61 = vpop.f32.mrf.mxu1 }
 0x1e3   : > { %v1186_v62 = vpop.f32.mrf.mxu1 }
 0x1e5   : > { %v1525_v63 = vpop.f32.mrf.mxu1 }
 0x28c   : > { %v1123_v0 = vpop.f32.mrf.mxu0 }
 0x28d   : > { %v1124_v2 = vadd.f32 %v1123_v0, %v1034_v56 }
 0x28e   : > { %v1518_v4 = vpop.f32.mrf.mxu0 }
 0x28f   : > { %v1190_v5 = vadd.f32 %v1183_v60, %v1124_v2 }
 0x290   : > { %v1126_v6 = vpop.f32.mrf.mxu0 }
 0x291   : > { %v1199_v7 = vadd.f32 %v1389_v3, %v1190_v5  ;;  %v1127_v8 = vadd.f32 %v1126_v6, %v1037_v58 }
 0x292   : > { %v1519_v9 = vpop.f32.mrf.mxu0 }
 0x293   : > { %v1210_v10 = vand.u32 2147483647, %v1199_v7  ;;  %v1191_v11 = vadd.f32 %v1186_v62, %v1127_v8  ;;  %v1204_v32 = vmax.f32 %v1199_v7, 0.0  ;;  %vm1206_vm7 = vcmp.ne.f32.partialorder %v1199_v7, %v1199_v7 }
 0x295   : > { %v1212_v12 = vsub.f32 0.0, %v1210_v10  ;;  %v1200_v13 = vadd.f32 %v1389_v3, %v1191_v11 }
 0x297   : > { %v1214_v14 = vmul.f32 1.442695, %v1212_v12  ;;  %v1211_v15 = vand.u32 2147483647, %v1200_v13  ;;  %v1205_v38 = vmax.f32 %v1200_v13, 0.0  ;;  %vm1207_vm10 = vcmp.ne.f32.partialorder %v1200_v13, %v1200_v13 }
 0x299   : > { %1608 = vpow2.f32 %v1214_v14  ;;  %v1213_v16 = vsub.f32 0.0, %v1211_v15 }
 0x29b   : > { %v1216_v17 = vmul.f32 1.442695, %v1213_v16 }
 0x29d   : > { %1610 = vpow2.f32 %v1216_v17 }
 0x2a6   : > { %v1609_v18 = vpop.eup %1608 }
 0x2a7   : > { %v1218_v19 = vadd.f32 1.0, %v1609_v18  ;;  %v1221_v22 = vmul.f32 -0.5, %v1609_v18  ;;  %v1224_v25 = vand.u32 2147483647, %v1609_v18 }
 0x2a9   : > { %1612 = vlog2.f32 %v1218_v19  ;;  %v1222_v23 = vadd.f32 1.0, %v1221_v22  ;;  %vm1225_vm5 = vcmp.lt.f32.partialorder %v1224_v25, 0.0004427343 }
 0x2aa   : > { %v1611_v20 = vpop.eup %1610 }
 0x2ab   : > { %v1227_v21 = vadd.f32 1.0, %v1611_v20  ;;  %v1230_v24 = vmul.f32 -0.5, %v1611_v20  ;;  %v1223_v30 = vmul.f32 %v1609_v18, %v1222_v23  ;;  %v1233_v33 = vand.u32 2147483647, %v1611_v20 }
 0x2ad   : > { %1614 = vlog2.f32 %v1227_v21  ;;  %v1231_v31 = vadd.f32 1.0, %v1230_v24  ;;  %vm1234_vm9 = vcmp.lt.f32.partialorder %v1233_v33, 0.0004427343 }
 0x2af   : > { %v1232_v37 = vmul.f32 %v1611_v20, %v1231_v31 }
 0x2b6   : > { %v1613_v27 = vpop.eup %1612 }
 0x2b7   : > { %v1220_v29 = vmul.f32 0.6931472, %v1613_v27 }
 0x2b9   : > { %v1226_v34 = vsel %vm1225_vm5, %v1223_v30, %v1220_v29 }
 0x2ba   : > { %v1615_v35 = vpop.eup %1614  ;;  %v1236_v26 = vadd.f32 %v1226_v34, %v1204_v32 }
 0x2bb   : > { %v1229_v36 = vmul.f32 0.6931472, %v1615_v35 }
 0x2bc   : > { %v1238_v47 = vsel %vm1206_vm7, %v1199_v7, %v1236_v26 }
 0x2bd   : > { %v1240_v39 = vsel %vm1203_vm6, %v1238_v47, %v1199_v7  ;;  %v1235_v40 = vsel %vm1234_vm9, %v1232_v37, %v1229_v36 }
 0x2be   : > { %1243 = vst.msk [vmem:[%s383_s12] sm:$0xff] %vm1242_vm8, %v1240_v39  ;;  %v1237_v41 = vadd.f32 %v1235_v40, %v1205_v38 }
 0x2c0   : > { %v1239_v42 = vsel %vm1207_vm10, %v1200_v13, %v1237_v41 }
 0x2c1   : > { %v1241_v43 = vsel %vm1203_vm6, %v1239_v42, %v1200_v13 }
 0x2c2   : > { %1244 = vst.msk [vmem:[%s383_s12 + $0x8] sm:$0xff] %vm1242_vm8, %v1241_v43 }
 0x2c3 PF: > { %s20_s13 = sadd.s32 1, %s1622_s13  }
 0x2c4   : > { %p17_p4 = scmp.ge.s32.totalorder %s20_s13, 4  }
 0x2c6   :  { %19 = sbr.rel (!%p17_p4) target bundleno = 1 (0x1), region = 93 }

</bundles_post_ra>
